<compile_context>
chip_gen: v5e
topology: v5e:2x2
jax: 0.10.0
libtpu: 0.0.40
codegen_flags: <defaults>
</compile_context>

<pallas_src>
import math

import numpy as np
import jax
import jax.numpy as jnp
from jax.experimental import pallas as pl
from jax.experimental.pallas import tpu as pltpu


# --------------------------------------------------------------------------- #
# Host-side precompute
# --------------------------------------------------------------------------- #
def bilinear_matrix(out_size: int, in_size: int) -> np.ndarray:
    """Row-stochastic 1-D interpolation matrix matching
    F.interpolate(mode='bilinear', align_corners=False): y = A @ x."""
    A = np.zeros((out_size, in_size), dtype=np.float32)
    if in_size == 1:
        A[:, 0] = 1.0
        return A
    scale = in_size / out_size
    for t in range(out_size):
        s = (t + 0.5) * scale - 0.5
        s = max(s, 0.0)
        i0 = min(int(np.floor(s)), in_size - 1)
        i1 = min(i0 + 1, in_size - 1)
        w1 = s - i0
        A[t, i0] += 1.0 - w1
        A[t, i1] += w1
    return A


def _vmem_capacity_bytes() -> int:
    """Generation-aware VMEM capacity (falls back to the smallest, v7x, size)."""
    try:
        return int(pltpu.get_tpu_info().vmem_capacity_bytes)
    except Exception:
        return 64 * 2**20


def _sublane_multiple(dtype) -> int:
    # f32 -> 8, bf16 -> 16, int8/fp8 -> 32 (packed-sublane tiling).
    return max(8, 32 // jnp.dtype(dtype).itemsize)


def _pick_channel_chunk(c, per_chan_bytes, chan_budget, aligned_ok,
                        lane_unit=None, prefer_multi=False):
    divisors = [d for d in range(c, 0, -1) if c % d == 0]
    aligned = [d for d in divisors if aligned_ok(d)]
    if not aligned:
        aligned = [c]
    if prefer_multi:                      # keep >=2 grid steps (v7x: 2 TCs/chip)
        multi = [d for d in aligned if d < c]
        if multi:
            aligned = multi
    fits = [d for d in aligned if d * per_chan_bytes <= chan_budget]
    if lane_unit is not None:
        lane_dense = [d for d in fits if (d * lane_unit) % 128 == 0]
        if lane_dense:
            return lane_dense[0]          # largest fitting, lane-dense output
    if fits:
        return fits[0]                    # largest fitting
    return aligned[-1]                    # smallest legal; caller raises limit


# --------------------------------------------------------------------------- #
# Kernels
# --------------------------------------------------------------------------- #
def make_kron_kernel(num_scales, tc, ht, wt):
    S = num_scales

    def kernel(*refs):
        w_t_ref = refs[0]                       # (S, S) gate_conv.weight.T, f32
        feat_refs = refs[1:1 + S]               # each (TC, Hi*Wi), input dtype
        b_refs = refs[1 + S:1 + 2 * S]          # each (Hi*Wi, Ht*Wt), MXU dtype
        q_refs = refs[1 + 2 * S:1 + 3 * S]      # each (1, Hi*Wi), f32 pool weights
        o_ref = refs[1 + 3 * S]                 # (TC, Ht*Wt)
        acc_ref = refs[1 + 3 * S + 1]           # VMEM scratch (TC, Ht*Wt) f32

        # pass 1: analytic global-average pool (exact mean of the resize);
        # f32 via promotion with the f32 q vectors (no explicit cast pass).
        pooled = [jnp.sum(feat_refs[i][...] * q_refs[i][...], axis=1, keepdims=True)
                  for i in range(S)]                                   # (TC, 1) f32

        # gates: 1x1 Conv1d over the scale axis + softmax, pure f32 VPU.
        g = pooled[0] * w_t_ref[0:1, :]
        for k in range(1, S):
            g = g + pooled[k] * w_t_ref[k:k + 1, :]
        g = g - jnp.max(g, axis=1, keepdims=True)
        e = jnp.exp(g)
        gates = e / jnp.sum(e, axis=1, keepdims=True)                  # (TC, S)

        # pass 2: gate folded into x BEFORE the single matmul per scale,
        # accumulated into a VMEM scratch accumulator.
        acc_ref[...] = jnp.zeros_like(acc_ref)
        for i in range(S):
            xg = (feat_refs[i][...] * gates[:, i:i + 1]).astype(b_refs[i].dtype)
            acc_ref[...] += jnp.dot(xg, b_refs[i][...],
                                    preferred_element_type=jnp.float32)
        o_ref[...] = acc_ref[...].astype(o_ref.dtype)

    return kernel


def make_matmul_kernel(num_scales, tc, ht, wt, his, wis):
    S = num_scales

    def kernel(*refs):
        w_t_ref = refs[0]                       # (S, S) f32
        feat_refs = refs[1:1 + S]               # each (TC*Hi, Wi)
        awt_refs = refs[1 + S:1 + 2 * S]        # each (Wi, Wt), MXU dtype
        ah_refs = refs[1 + 2 * S:1 + 3 * S]     # each (Ht, Hi), MXU dtype
        cw_refs = refs[1 + 3 * S:1 + 4 * S]     # each (1, Wi), f32 colsum(Aw)
        ch_refs = refs[1 + 4 * S:1 + 5 * S]     # each (1, Hi), f32 colsum(Ah)/(Ht*Wt)
        o_ref = refs[1 + 5 * S]                 # (Ht, TC*Wt)
        acc_ref = refs[1 + 5 * S + 1]           # VMEM scratch (Ht, TC*Wt) f32

        # pass 1: analytic global-average pool (f32 via promotion).
        pooled = []
        for i in range(S):
            v = jnp.sum(feat_refs[i][...] * cw_refs[i][...], axis=1, keepdims=True)
            v = v.reshape(tc, his[i])
            pooled.append(jnp.sum(v * ch_refs[i][...], axis=1, keepdims=True))

        g = pooled[0] * w_t_ref[0:1, :]
        for k in range(1, S):
            g = g + pooled[k] * w_t_ref[k:k + 1, :]
        g = g - jnp.max(g, axis=1, keepdims=True)
        e = jnp.exp(g)
        gates = e / jnp.sum(e, axis=1, keepdims=True)                  # (TC, S)

        # pass 2: gated bilinear resize as two flat MXU matmuls per scale.
        acc_ref[...] = jnp.zeros_like(acc_ref)
        for i in range(S):
            hi = his[i]
            mxu_dt = awt_refs[i].dtype
            # gate folded into x BEFORE the width matmul (smaller f32 VPU pass).
            g_rows = jnp.broadcast_to(gates[:, i:i + 1], (tc, hi)).reshape(tc * hi, 1)
            xg = (feat_refs[i][...] * g_rows).astype(mxu_dt)           # (TC*Hi, Wi)
            t1 = jnp.dot(xg, awt_refs[i][...],
                         preferred_element_type=jnp.float32)           # (TC*Hi, Wt)
            # cast BEFORE the cross-sublane relayout (halves vregs/bytes moved).
            t1 = t1.astype(mxu_dt)
            t2 = t1.reshape(tc, hi, wt).transpose(1, 0, 2).reshape(hi, tc * wt)
            acc_ref[...] += jnp.dot(ah_refs[i][...], t2,
                                    preferred_element_type=jnp.float32)
        o_ref[...] = acc_ref[...].astype(o_ref.dtype)

    return kernel


# --------------------------------------------------------------------------- #
# Wrapper
# --------------------------------------------------------------------------- #
def gated_feature_fusion(feats, w_gate, target_size=None, *,
                         channel_chunk=None, mxu_dtype=jnp.bfloat16, path=None):
    """feats: list of (N, C, Hi, Wi) arrays (f32 or bf16).
    w_gate: (S, S) Conv1d(num_scales, num_scales, 1, bias=False) weight
    (kernel dim squeezed).  Returns fused (N, C, Ht, Wt) in feats[0].dtype."""
    S = len(feats)
    n, c = int(feats[0].shape[0]), int(feats[0].shape[1])
    if target_size is None:
        ht, wt = int(feats[0].shape[2]), int(feats[0].shape[3])
    else:
        ht, wt = int(target_size[0]), int(target_size[1])
    his = [int(f.shape[2]) for f in feats]
    wis = [int(f.shape[3]) for f in feats]

    a_hs = [bilinear_matrix(ht, h) for h in his]                   # (Ht, Hi) f32
    a_ws = [bilinear_matrix(wt, w) for w in wis]                   # (Wt, Wi) f32
    w_t = jnp.asarray(w_gate, dtype=jnp.float32).T                 # (S, S)

    in_b = jnp.dtype(feats[0].dtype).itemsize
    out_b = in_b
    mxu_b = jnp.dtype(mxu_dtype).itemsize
    sub = _sublane_multiple(feats[0].dtype)

    if path is None:
        kron_bytes = sum(h * w for h, w in zip(his, wis)) * ht * wt * mxu_b
        path = "kron" if kron_bytes <= 4 * 2**20 else "matmul"

    cap = _vmem_capacity_bytes()
    budget = min(int(0.72 * cap), 64 * 2**20)   # ~46 MiB on v7x, 64 MiB on v5e/v6e
    prefer_multi = (n == 1)

    if path == "kron":
        # one matmul per scale: (TC, Hi*Wi) @ B_i, B_i = (Ah kron Aw)^T
        b_ops = [jnp.asarray(np.kron(ah, aw).T, dtype=mxu_dtype)
                 for ah, aw in zip(a_hs, a_ws)]                    # (Hi*Wi, Ht*Wt)
        q_ops = [jnp.asarray((np.kron(ah.sum(0), aw.sum(0)) / float(ht * wt))[None, :])
                 for ah, aw in zip(a_hs, a_ws)]                    # (1, Hi*Wi) f32
        feats_flat = [f.reshape(n, c, h * w) for f, h, w in zip(feats, his, wis)]

        const_bytes = 2 * (sum(b.size * mxu_b for b in b_ops)
                           + sum(q.size * 4 for q in q_ops) + S * S * 4)
        per_chan = (2 * sum(h * w for h, w in zip(his, wis)) * in_b   # dbuf inputs
                    + max(h * w for h, w in zip(his, wis)) * mxu_b    # gated/cast copy
                    + ht * wt * 4                                     # f32 accumulator
                    + 2 * ht * wt * out_b)                            # dbuf output

        def aligned_ok(d):
            return d == c or d % sub == 0

        if channel_chunk is None:
            tc = _pick_channel_chunk(c, per_chan, budget - const_bytes - (2 << 20),
                                     aligned_ok, lane_unit=None,
                                     prefer_multi=prefer_multi)
        else:
            tc = int(channel_chunk)
            assert c % tc == 0 and aligned_ok(tc), "bad channel_chunk"
        n_chunks = c // tc

        need = const_bytes + tc * per_chan + (4 << 20)
        if need > int(0.9 * cap):
            raise ValueError("GatedFeatureFusion tile does not fit VMEM; "
                             "reduce channel_chunk or spatial sizes")
        vmem_limit = int(min(int(0.9 * cap), max(32 * 2**20, need)))

        in_specs = [pl.BlockSpec((S, S), lambda b, cc: (0, 0))]
        for h, w in zip(his, wis):
            in_specs.append(pl.BlockSpec((None, tc, h * w), lambda b, cc: (b, cc, 0)))
        # TODO(synk): constant operands could use pipeline_mode=pl.Buffered(1)
        # to reclaim their (never refilled) second pipeline buffer.
        for op in b_ops:
            in_specs.append(pl.BlockSpec(op.shape, lambda b, cc: (0, 0)))
        for op in q_ops:
            in_specs.append(pl.BlockSpec(op.shape, lambda b, cc: (0, 0)))
        out_spec = pl.BlockSpec((None, tc, ht * wt), lambda b, cc: (b, cc, 0))

        out_k = pl.pallas_call(
            make_kron_kernel(S, tc, ht, wt),
            out_shape=jax.ShapeDtypeStruct((n, c, ht * wt), feats[0].dtype),
            grid=(n, n_chunks),
            in_specs=in_specs,
            out_specs=out_spec,
            scratch_shapes=[pltpu.VMEM((tc, ht * wt), jnp.float32)],
            compiler_params=pltpu.CompilerParams(
                dimension_semantics=("parallel", "parallel"),
                vmem_limit_bytes=vmem_limit),
        )(w_t, *feats_flat, *b_ops, *q_ops)
        return out_k.reshape(n, c, ht, wt)     # free row-major reshape

    # ---- two-flat-matmul fallback path (large spatial dims) ----
    ah_ops = [jnp.asarray(a, dtype=mxu_dtype) for a in a_hs]            # (Ht, Hi)
    awt_ops = [jnp.asarray(a.T, dtype=mxu_dtype) for a in a_ws]         # (Wi, Wt)
    cw_ops = [jnp.asarray(a.sum(0)[None, :]) for a in a_ws]             # (1, Wi) f32
    ch_ops = [jnp.asarray(a.sum(0)[None, :] / float(ht * wt)) for a in a_hs]
    feats_flat = [f.reshape(n, c * h, w) for f, h, w in zip(feats, his, wis)]

    const_bytes = 2 * (sum((a.size + b.size) * mxu_b
                           for a, b in zip(ah_ops, awt_ops))
                       + sum((x.size + y.size) * 4
                             for x, y in zip(cw_ops, ch_ops)) + S * S * 4)
    per_chan = (2 * sum(h * w for h, w in zip(his, wis)) * in_b
                + max(h * w * mxu_b + h * wt * (4 + 2 * mxu_b)
                      for h, w in zip(his, wis))
                + ht * wt * 4
                + 2 * ht * wt * out_b)

    def aligned_ok(d):
        return d == c or all((d * h) % sub == 0 for h in his)

    if channel_chunk is None:
        tc = _pick_channel_chunk(c, per_chan, budget - const_bytes - (2 << 20),
                                 aligned_ok, lane_unit=wt,
                                 prefer_multi=prefer_multi)
    else:
        tc = int(channel_chunk)
        assert c % tc == 0 and aligned_ok(tc), "bad channel_chunk"
    n_chunks = c // tc

    need = const_bytes + tc * per_chan + (4 << 20)
    if need > int(0.9 * cap):
        raise ValueError("GatedFeatureFusion tile does not fit VMEM; "
                         "reduce channel_chunk or spatial sizes")
    vmem_limit = int(min(int(0.9 * cap), max(32 * 2**20, need)))

    in_specs = [pl.BlockSpec((S, S), lambda b, cc: (0, 0))]
    for h, w in zip(his, wis):
        in_specs.append(pl.BlockSpec((None, tc * h, w), lambda b, cc: (b, cc, 0)))
    for op in (*awt_ops, *ah_ops, *cw_ops, *ch_ops):
        in_specs.append(pl.BlockSpec(op.shape, lambda b, cc: (0, 0)))
    out_spec = pl.BlockSpec((None, None, ht, tc * wt), lambda b, cc: (b, cc, 0, 0))

    out_k = pl.pallas_call(
        make_matmul_kernel(S, tc, ht, wt, his, wis),
        out_shape=jax.ShapeDtypeStruct((n, n_chunks, ht, tc * wt), feats[0].dtype),
        grid=(n, n_chunks),
        in_specs=in_specs,
        out_specs=out_spec,
        scratch_shapes=[pltpu.VMEM((ht, tc * wt), jnp.float32)],
        compiler_params=pltpu.CompilerParams(
            dimension_semantics=("parallel", "parallel"),
            vmem_limit_bytes=vmem_limit),
    )(w_t, *feats_flat, *awt_ops, *ah_ops, *cw_ops, *ch_ops)

    out = out_k.reshape(n, n_chunks, ht, tc, wt)
    out = out.transpose(0, 1, 3, 2, 4).reshape(n, c, ht, wt)   # layout plumbing only
    return out


# --------------------------------------------------------------------------- #
# Pure-JAX reference (matches the PyTorch module)
# --------------------------------------------------------------------------- #
def reference(feats, w_gate, target_size):
    ht, wt = target_size
    a_hs = [jnp.asarray(bilinear_matrix(ht, int(f.shape[2]))) for f in feats]
    a_ws = [jnp.asarray(bilinear_matrix(wt, int(f.shape[3]))) for f in feats]
    ups = [jnp.einsum('nchw,Hh,Ww->ncHW', f, ah, aw)
           for f, ah, aw in zip(feats, a_hs, a_ws)]
    pooled = jnp.stack([u.mean(axis=(2, 3)) for u in ups], axis=2)   # (N, C, S)
    gates = jnp.einsum('jk,nck->njc', w_gate, pooled)                # (N, S, C)
    gates = jax.nn.softmax(gates, axis=1)
    return sum(gates[:, i, :][:, :, None, None] * ups[i] for i in range(len(feats)))


if __name__ == "__main__":
    key = jax.random.PRNGKey(0)
    k0, k1, k2, kw = jax.random.split(key, 4)

    N, C, S = 2, 16, 3
    target = (16, 16)
    feats = [
        jax.random.normal(k0, (N, C, 16, 16), jnp.float32),
        jax.random.normal(k1, (N, C, 8, 8), jnp.float32),
        jax.random.normal(k2, (N, C, 4, 4), jnp.float32),
    ]
    bound = 1.0 / math.sqrt(S)
    w_gate = jax.random.uniform(kw, (S, S), jnp.float32, -bound, bound)

    ref = reference(feats, w_gate, target)

    # 1) Kronecker single-matmul path, f32 operands: tight correctness check.
    out = gated_feature_fusion(feats, w_gate, target_size=target,
                               channel_chunk=8, mxu_dtype=jnp.float32, path="kron")
    out = jax.block_until_ready(out)
    assert out.shape == (N, C) + target
    if not jnp.allclose(out, ref, atol=2e-4, rtol=2e-4):
        raise SystemExit("kron f32 kernel/reference mismatch")

    # 2) Two-matmul fallback path, f32 operands: tight check of that code path.
    out_mm = gated_feature_fusion(feats, w_gate, target_size=target,
                                  channel_chunk=8, mxu_dtype=jnp.float32,
                                  path="matmul")
    out_mm = jax.block_until_ready(out_mm)
    if not jnp.allclose(out_mm, ref, atol=2e-4, rtol=2e-4):
        raise SystemExit("matmul f32 kernel/reference mismatch")

    # 3) Default performance configuration: bf16 features + bf16 MXU operands,
    #    auto path (kron) and auto channel chunk, f32 in-kernel accumulation.
    feats_bf16 = [f.astype(jnp.bfloat16) for f in feats]
    out_bf = gated_feature_fusion(feats_bf16, w_gate, target_size=target)
    out_bf = jax.block_until_ready(out_bf)
    if not jnp.allclose(out_bf.astype(jnp.float32), ref, atol=5e-2, rtol=5e-2):
        raise SystemExit("bf16 kernel/reference mismatch")

    print("KERNEL_OK")
</pallas_src>

<mosaic_0001>
module attributes {stable_mosaic.version = 11 : i64} {
  func.func @kernel(%arg0: i32, %arg1: i32, %arg2: memref<3x3xf32, #tpu.memory_space<vmem>>, %arg3: memref<1x8x256xf32, #tpu.memory_space<vmem>>, %arg4: memref<1x8x64xf32, #tpu.memory_space<vmem>>, %arg5: memref<1x8x16xf32, #tpu.memory_space<vmem>>, %arg6: memref<256x256xf32, #tpu.memory_space<vmem>>, %arg7: memref<64x256xf32, #tpu.memory_space<vmem>>, %arg8: memref<16x256xf32, #tpu.memory_space<vmem>>, %arg9: memref<1x256xf32, #tpu.memory_space<vmem>>, %arg10: memref<1x64xf32, #tpu.memory_space<vmem>>, %arg11: memref<1x16xf32, #tpu.memory_space<vmem>>, %arg12: memref<1x8x256xf32, #tpu.memory_space<vmem>>, %arg13: memref<8x256xf32, #tpu.memory_space<vmem>>) attributes {dimension_semantics = [#tpu.dimension_semantics<parallel>, #tpu.dimension_semantics<parallel>], iteration_bounds = array<i64: 2, 2>, scalar_prefetch = 0 : i64, scratch_operands = 1 : i64, tpu.core_type = #tpu.core_type<tc>, window_params = [{pipeline_mode = #tpu.pipeline_mode<synchronous>, transform_indices = @transform_0, window_bounds = array<i64: 3, 3>}, {transform_indices = @transform_1, window_bounds = array<i64: 1, 8, 256>}, {transform_indices = @transform_2, window_bounds = array<i64: 1, 8, 64>}, {transform_indices = @transform_3, window_bounds = array<i64: 1, 8, 16>}, {pipeline_mode = #tpu.pipeline_mode<synchronous>, transform_indices = @transform_4, window_bounds = array<i64: 256, 256>}, {pipeline_mode = #tpu.pipeline_mode<synchronous>, transform_indices = @transform_5, window_bounds = array<i64: 64, 256>}, {pipeline_mode = #tpu.pipeline_mode<synchronous>, transform_indices = @transform_6, window_bounds = array<i64: 16, 256>}, {pipeline_mode = #tpu.pipeline_mode<synchronous>, transform_indices = @transform_7, window_bounds = array<i64: 1, 256>}, {pipeline_mode = #tpu.pipeline_mode<synchronous>, transform_indices = @transform_8, window_bounds = array<i64: 1, 64>}, {pipeline_mode = #tpu.pipeline_mode<synchronous>, transform_indices = @transform_9, window_bounds = array<i64: 1, 16>}, {transform_indices = @transform_10, window_bounds = array<i64: 1, 8, 256>}]} {
    %c0 = arith.constant 0 : index
    %c0_0 = arith.constant 0 : index
    %c0_1 = arith.constant 0 : index
    %0 = vector.load %arg3[%c0, %c0_0, %c0_1] : memref<1x8x256xf32, #tpu.memory_space<vmem>>, vector<1x8x256xf32>
    %1 = vector.shape_cast %0 : vector<1x8x256xf32> to vector<8x256xf32>
    %c0_2 = arith.constant 0 : index
    %c0_3 = arith.constant 0 : index
    %2 = vector.load %arg9[%c0_2, %c0_3] : memref<1x256xf32, #tpu.memory_space<vmem>>, vector<1x256xf32>
    %3 = vector.broadcast %2 : vector<1x256xf32> to vector<8x256xf32>
    %4 = arith.mulf %1, %3 : vector<8x256xf32>
    %cst = arith.constant dense<0.000000e+00> : vector<8xf32>
    %5 = vector.multi_reduction <add>, %4, %cst [1] : vector<8x256xf32> to vector<8xf32>
    %6 = vector.shape_cast %5 : vector<8xf32> to vector<8x1xf32>
    %c0_4 = arith.constant 0 : index
    %c0_5 = arith.constant 0 : index
    %c0_6 = arith.constant 0 : index
    %7 = vector.load %arg4[%c0_4, %c0_5, %c0_6] : memref<1x8x64xf32, #tpu.memory_space<vmem>>, vector<1x8x64xf32>
    %8 = vector.shape_cast %7 : vector<1x8x64xf32> to vector<8x64xf32>
    %c0_7 = arith.constant 0 : index
    %c0_8 = arith.constant 0 : index
    %9 = vector.load %arg10[%c0_7, %c0_8] : memref<1x64xf32, #tpu.memory_space<vmem>>, vector<1x64xf32>
    %10 = vector.broadcast %9 : vector<1x64xf32> to vector<8x64xf32>
    %11 = arith.mulf %8, %10 : vector<8x64xf32>
    %cst_9 = arith.constant dense<0.000000e+00> : vector<8xf32>
    %12 = vector.multi_reduction <add>, %11, %cst_9 [1] : vector<8x64xf32> to vector<8xf32>
    %13 = vector.shape_cast %12 : vector<8xf32> to vector<8x1xf32>
    %c0_10 = arith.constant 0 : index
    %c0_11 = arith.constant 0 : index
    %c0_12 = arith.constant 0 : index
    %14 = vector.load %arg5[%c0_10, %c0_11, %c0_12] : memref<1x8x16xf32, #tpu.memory_space<vmem>>, vector<1x8x16xf32>
    %15 = vector.shape_cast %14 : vector<1x8x16xf32> to vector<8x16xf32>
    %c0_13 = arith.constant 0 : index
    %c0_14 = arith.constant 0 : index
    %16 = vector.load %arg11[%c0_13, %c0_14] : memref<1x16xf32, #tpu.memory_space<vmem>>, vector<1x16xf32>
    %17 = vector.broadcast %16 : vector<1x16xf32> to vector<8x16xf32>
    %18 = arith.mulf %15, %17 : vector<8x16xf32>
    %cst_15 = arith.constant dense<0.000000e+00> : vector<8xf32>
    %19 = vector.multi_reduction <add>, %18, %cst_15 [1] : vector<8x16xf32> to vector<8xf32>
    %20 = vector.shape_cast %19 : vector<8xf32> to vector<8x1xf32>
    %c0_16 = arith.constant 0 : index
    %c0_17 = arith.constant 0 : index
    %21 = vector.load %arg2[%c0_16, %c0_17] : memref<3x3xf32, #tpu.memory_space<vmem>>, vector<1x3xf32>
    %22 = vector.broadcast %6 : vector<8x1xf32> to vector<8x3xf32>
    %23 = vector.broadcast %21 : vector<1x3xf32> to vector<8x3xf32>
    %24 = arith.mulf %22, %23 : vector<8x3xf32>
    %c1 = arith.constant 1 : index
    %c0_18 = arith.constant 0 : index
    %25 = vector.load %arg2[%c1, %c0_18] : memref<3x3xf32, #tpu.memory_space<vmem>>, vector<1x3xf32>
    %26 = vector.broadcast %13 : vector<8x1xf32> to vector<8x3xf32>
    %27 = vector.broadcast %25 : vector<1x3xf32> to vector<8x3xf32>
    %28 = arith.mulf %26, %27 : vector<8x3xf32>
    %29 = arith.addf %24, %28 : vector<8x3xf32>
    %c2 = arith.constant 2 : index
    %c0_19 = arith.constant 0 : index
    %30 = vector.load %arg2[%c2, %c0_19] : memref<3x3xf32, #tpu.memory_space<vmem>>, vector<1x3xf32>
    %31 = vector.broadcast %20 : vector<8x1xf32> to vector<8x3xf32>
    %32 = vector.broadcast %30 : vector<1x3xf32> to vector<8x3xf32>
    %33 = arith.mulf %31, %32 : vector<8x3xf32>
    %34 = arith.addf %29, %33 : vector<8x3xf32>
    %cst_20 = arith.constant dense<0xFF800000> : vector<8xf32>
    %35 = vector.multi_reduction <maximumf>, %34, %cst_20 [1] : vector<8x3xf32> to vector<8xf32>
    %36 = vector.shape_cast %35 : vector<8xf32> to vector<8x1xf32>
    %37 = vector.broadcast %36 : vector<8x1xf32> to vector<8x3xf32>
    %38 = arith.subf %34, %37 : vector<8x3xf32>
    %39 = math.exp %38 : vector<8x3xf32>
    %cst_21 = arith.constant dense<0.000000e+00> : vector<8xf32>
    %40 = vector.multi_reduction <add>, %39, %cst_21 [1] : vector<8x3xf32> to vector<8xf32>
    %41 = vector.shape_cast %40 : vector<8xf32> to vector<8x1xf32>
    %42 = vector.broadcast %41 : vector<8x1xf32> to vector<8x3xf32>
    %43 = arith.divf %39, %42 : vector<8x3xf32>
    %cst_22 = arith.constant 0.000000e+00 : f32
    %44 = vector.broadcast %cst_22 : f32 to vector<8x256xf32>
    %c0_23 = arith.constant 0 : index
    %c0_24 = arith.constant 0 : index
    %45 = vector.load %arg13[%c0_23, %c0_24] : memref<8x256xf32, #tpu.memory_space<vmem>>, vector<8x256xf32>
    tpu.vector_store %arg13[%c0_23, %c0_24], %44 {strides = array<i32>} : memref<8x256xf32, #tpu.memory_space<vmem>>, vector<8x256xf32>,
    %c0_25 = arith.constant 0 : index
    %c0_26 = arith.constant 0 : index
    %c0_27 = arith.constant 0 : index
    %46 = vector.load %arg3[%c0_25, %c0_26, %c0_27] : memref<1x8x256xf32, #tpu.memory_space<vmem>>, vector<1x8x256xf32>
    %47 = vector.shape_cast %46 : vector<1x8x256xf32> to vector<8x256xf32>
    %48 = vector.extract_strided_slice %43 {offsets = [0, 0], sizes = [8, 1], strides = [1, 1]} : vector<8x3xf32> to vector<8x1xf32>
    %49 = vector.broadcast %48 : vector<8x1xf32> to vector<8x256xf32>
    %50 = arith.mulf %47, %49 : vector<8x256xf32>
    %c0_28 = arith.constant 0 : index
    %c0_29 = arith.constant 0 : index
    %51 = vector.load %arg13[%c0_28, %c0_29] : memref<8x256xf32, #tpu.memory_space<vmem>>, vector<8x256xf32>
    %c0_30 = arith.constant 0 : index
    %c0_31 = arith.constant 0 : index
    %52 = vector.load %arg6[%c0_30, %c0_31] : memref<256x256xf32, #tpu.memory_space<vmem>>, vector<256x256xf32>
    %cst_32 = arith.constant dense<0.000000e+00> : vector<8x256xf32>
    %53 = tpu.matmul %50, %52, %cst_32 {dimension_numbers = #tpu.dot_dimension_numbers<[1], [0], [0], [1], [0, 0, 1, 1], [], []>} : vector<8x256xf32>, vector<256x256xf32>, vector<8x256xf32> -> vector<8x256xf32>
    %54 = arith.addf %51, %53 : vector<8x256xf32>
    %c0_33 = arith.constant 0 : index
    %c0_34 = arith.constant 0 : index
    %55 = vector.load %arg13[%c0_33, %c0_34] : memref<8x256xf32, #tpu.memory_space<vmem>>, vector<8x256xf32>
    tpu.vector_store %arg13[%c0_33, %c0_34], %54 {strides = array<i32>} : memref<8x256xf32, #tpu.memory_space<vmem>>, vector<8x256xf32>,
    %c0_35 = arith.constant 0 : index
    %c0_36 = arith.constant 0 : index
    %c0_37 = arith.constant 0 : index
    %56 = vector.load %arg4[%c0_35, %c0_36, %c0_37] : memref<1x8x64xf32, #tpu.memory_space<vmem>>, vector<1x8x64xf32>
    %57 = vector.shape_cast %56 : vector<1x8x64xf32> to vector<8x64xf32>
    %58 = vector.extract_strided_slice %43 {offsets = [0, 1], sizes = [8, 1], strides = [1, 1]} : vector<8x3xf32> to vector<8x1xf32>
    %59 = vector.broadcast %58 : vector<8x1xf32> to vector<8x64xf32>
    %60 = arith.mulf %57, %59 : vector<8x64xf32>
    %c0_38 = arith.constant 0 : index
    %c0_39 = arith.constant 0 : index
    %61 = vector.load %arg13[%c0_38, %c0_39] : memref<8x256xf32, #tpu.memory_space<vmem>>, vector<8x256xf32>
    %c0_40 = arith.constant 0 : index
    %c0_41 = arith.constant 0 : index
    %62 = vector.load %arg7[%c0_40, %c0_41] : memref<64x256xf32, #tpu.memory_space<vmem>>, vector<64x256xf32>
    %cst_42 = arith.constant dense<0.000000e+00> : vector<8x256xf32>
    %63 = tpu.matmul %60, %62, %cst_42 {dimension_numbers = #tpu.dot_dimension_numbers<[1], [0], [0], [1], [0, 0, 1, 1], [], []>} : vector<8x64xf32>, vector<64x256xf32>, vector<8x256xf32> -> vector<8x256xf32>
    %64 = arith.addf %61, %63 : vector<8x256xf32>
    %c0_43 = arith.constant 0 : index
    %c0_44 = arith.constant 0 : index
    %65 = vector.load %arg13[%c0_43, %c0_44] : memref<8x256xf32, #tpu.memory_space<vmem>>, vector<8x256xf32>
    tpu.vector_store %arg13[%c0_43, %c0_44], %64 {strides = array<i32>} : memref<8x256xf32, #tpu.memory_space<vmem>>, vector<8x256xf32>,
    %c0_45 = arith.constant 0 : index
    %c0_46 = arith.constant 0 : index
    %c0_47 = arith.constant 0 : index
    %66 = vector.load %arg5[%c0_45, %c0_46, %c0_47] : memref<1x8x16xf32, #tpu.memory_space<vmem>>, vector<1x8x16xf32>
    %67 = vector.shape_cast %66 : vector<1x8x16xf32> to vector<8x16xf32>
    %68 = vector.extract_strided_slice %43 {offsets = [0, 2], sizes = [8, 1], strides = [1, 1]} : vector<8x3xf32> to vector<8x1xf32>
    %69 = vector.broadcast %68 : vector<8x1xf32> to vector<8x16xf32>
    %70 = arith.mulf %67, %69 : vector<8x16xf32>
    %c0_48 = arith.constant 0 : index
    %c0_49 = arith.constant 0 : index
    %71 = vector.load %arg13[%c0_48, %c0_49] : memref<8x256xf32, #tpu.memory_space<vmem>>, vector<8x256xf32>
    %c0_50 = arith.constant 0 : index
    %c0_51 = arith.constant 0 : index
    %72 = vector.load %arg8[%c0_50, %c0_51] : memref<16x256xf32, #tpu.memory_space<vmem>>, vector<16x256xf32>
    %cst_52 = arith.constant dense<0.000000e+00> : vector<8x256xf32>
    %73 = tpu.matmul %70, %72, %cst_52 {dimension_numbers = #tpu.dot_dimension_numbers<[1], [0], [0], [1], [0, 0, 1, 1], [], []>} : vector<8x16xf32>, vector<16x256xf32>, vector<8x256xf32> -> vector<8x256xf32>
    %74 = arith.addf %71, %73 : vector<8x256xf32>
    %c0_53 = arith.constant 0 : index
    %c0_54 = arith.constant 0 : index
    %75 = vector.load %arg13[%c0_53, %c0_54] : memref<8x256xf32, #tpu.memory_space<vmem>>, vector<8x256xf32>
    tpu.vector_store %arg13[%c0_53, %c0_54], %74 {strides = array<i32>} : memref<8x256xf32, #tpu.memory_space<vmem>>, vector<8x256xf32>,
    %c0_55 = arith.constant 0 : index
    %c0_56 = arith.constant 0 : index
    %76 = vector.load %arg13[%c0_55, %c0_56] : memref<8x256xf32, #tpu.memory_space<vmem>>, vector<8x256xf32>
    %c0_57 = arith.constant 0 : index
    %c0_58 = arith.constant 0 : index
    %c0_59 = arith.constant 0 : index
    %77 = vector.load %arg12[%c0_57, %c0_58, %c0_59] : memref<1x8x256xf32, #tpu.memory_space<vmem>>, vector<1x8x256xf32>
    %78 = vector.shape_cast %77 : vector<1x8x256xf32> to vector<8x256xf32>
    %79 = vector.shape_cast %76 : vector<8x256xf32> to vector<1x8x256xf32>
    tpu.vector_store %arg12[%c0_57, %c0_58, %c0_59], %79 {strides = array<i32>} : memref<1x8x256xf32, #tpu.memory_space<vmem>>, vector<1x8x256xf32>,
    return
  }
  func.func @transform_0(%arg0: i32, %arg1: i32) -> (i32, i32) {
    %c0_i32 = arith.constant 0 : i32
    %c0_i32_0 = arith.constant 0 : i32
    %c0_i32_1 = arith.constant 0 : i32
    return %c0_i32, %c0_i32_0 : i32, i32
  }
  func.func @transform_1(%arg0: i32, %arg1: i32) -> (i32, i32, i32) {
    %c0_i32 = arith.constant 0 : i32
    %c0_i32_0 = arith.constant 0 : i32
    return %arg0, %arg1, %c0_i32 : i32, i32, i32
  }
  func.func @transform_2(%arg0: i32, %arg1: i32) -> (i32, i32, i32) {
    %c0_i32 = arith.constant 0 : i32
    %c0_i32_0 = arith.constant 0 : i32
    return %arg0, %arg1, %c0_i32 : i32, i32, i32
  }
  func.func @transform_3(%arg0: i32, %arg1: i32) -> (i32, i32, i32) {
    %c0_i32 = arith.constant 0 : i32
    %c0_i32_0 = arith.constant 0 : i32
    return %arg0, %arg1, %c0_i32 : i32, i32, i32
  }
  func.func @transform_4(%arg0: i32, %arg1: i32) -> (i32, i32) {
    %c0_i32 = arith.constant 0 : i32
    %c0_i32_0 = arith.constant 0 : i32
    %c0_i32_1 = arith.constant 0 : i32
    return %c0_i32, %c0_i32_0 : i32, i32
  }
  func.func @transform_5(%arg0: i32, %arg1: i32) -> (i32, i32) {
    %c0_i32 = arith.constant 0 : i32
    %c0_i32_0 = arith.constant 0 : i32
    %c0_i32_1 = arith.constant 0 : i32
    return %c0_i32, %c0_i32_0 : i32, i32
  }
  func.func @transform_6(%arg0: i32, %arg1: i32) -> (i32, i32) {
    %c0_i32 = arith.constant 0 : i32
    %c0_i32_0 = arith.constant 0 : i32
    %c0_i32_1 = arith.constant 0 : i32
    return %c0_i32, %c0_i32_0 : i32, i32
  }
  func.func @transform_7(%arg0: i32, %arg1: i32) -> (i32, i32) {
    %c0_i32 = arith.constant 0 : i32
    %c0_i32_0 = arith.constant 0 : i32
    %c0_i32_1 = arith.constant 0 : i32
    return %c0_i32, %c0_i32_0 : i32, i32
  }
  func.func @transform_8(%arg0: i32, %arg1: i32) -> (i32, i32) {
    %c0_i32 = arith.constant 0 : i32
    %c0_i32_0 = arith.constant 0 : i32
    %c0_i32_1 = arith.constant 0 : i32
    return %c0_i32, %c0_i32_0 : i32, i32
  }
  func.func @transform_9(%arg0: i32, %arg1: i32) -> (i32, i32) {
    %c0_i32 = arith.constant 0 : i32
    %c0_i32_0 = arith.constant 0 : i32
    %c0_i32_1 = arith.constant 0 : i32
    return %c0_i32, %c0_i32_0 : i32, i32
  }
  func.func @transform_10(%arg0: i32, %arg1: i32) -> (i32, i32, i32) {
    %c0_i32 = arith.constant 0 : i32
    %c0_i32_0 = arith.constant 0 : i32
    return %arg0, %arg1, %c0_i32 : i32, i32, i32
  }
}

</mosaic_0001>

<bundles_post_ra>
// kernel: tpu_custom_call.1
= control target key start
LH: loop header
LB: loop body
LE: loop exit
PB: predicated region body
PF: predicated region fallthrough
CT: control target
= control target key end

     0   :  { %s1957_s0 = inlined_call_operand.hbm [shape: f32[3,3], index: 0, kind: input, shape index: {}]   ;;  %s1958_s1 = inlined_call_operand.hbm [shape: f32[2,16,256], index: 1, kind: input, shape index: {}]   ;;  %s1959_s2 = inlined_call_operand.hbm [shape: f32[2,16,64], index: 2, kind: input, shape index: {}]   ;;  %s1960_s3 = inlined_call_operand.hbm [shape: f32[2,16,16], index: 3, kind: input, shape index: {}]   ;;  %s1961_s4 = inlined_call_operand.hbm [shape: f32[256,256], index: 4, kind: input, shape index: {}]   ;;  %s1962_s5 = inlined_call_operand.hbm [shape: f32[64,256], index: 5, kind: input, shape index: {}]   ;;  %s1963_s6 = inlined_call_operand.hbm [shape: f32[16,256], index: 6, kind: input, shape index: {}]   ;;  %s1964_s7 = inlined_call_operand.vmem [shape: f32[1,256], index: 7, kind: input, shape index: {}]   ;;  %s1965_s8 = inlined_call_operand.vmem [shape: f32[1,64], index: 8, kind: input, shape index: {}]   ;;  %s1966_s9 = inlined_call_operand.vmem [shape: f32[1,16], index: 9, kind: input, shape index: {}]   ;;  %s1967_s10 = inlined_call_operand.hbm [shape: f32[2,16,256], index: 10, kind: output, shape index: {}]  }
   0x1   :  { %1978 = sst [smem:[#allocation31_spill]] %s1957_s0 }
   0x2   :  { %1979 = sst [smem:[#allocation32_spill]] %s1958_s1 }
   0x3   :  { %1980 = sst [smem:[#allocation33_spill]] %s1961_s4 }
   0x4   :  { %1981 = sst [smem:[#allocation34_spill]] %s1962_s5 }
   0x5   :  { %1982 = sst [smem:[#allocation35_spill]] %s1963_s6 }
   0x6   :  { %1983 = sst [smem:[#allocation36_spill]] %s1965_s8 }
   0x7   :  { %1984 = sst [smem:[#allocation37_spill]] %s1967_s10 }
   0x8   :  { %15 = vsyncpa [#allocation4], 0 }
   0x9   :  { %16 = vsyncpa [#allocation7], 0 }
   0xa   :  { %18 = vsyncpa [#allocation7 + $0x1], 0 }
   0xb   :  { %19 = vsyncpa [#allocation10], 0 }
   0xc   :  { %21 = vsyncpa [#allocation10 + $0x1], 0 }
   0xd   :  { %22 = vsyncpa [#allocation13], 0 }
   0xe   :  { %23 = vsyncpa [#allocation5], 0 }
   0xf   :  { %25 = vsyncpa [#allocation5 + $0x1], 0  ;;  %s1673_s13 = smov 0   ;;  %s1675_s14 = smov 0  }
  0x10   :  { %s1677_s15 = smov 0   ;;  %s1679_s16 = smov 0  }
  0x11   :  { %s1681_s17 = smov 0   ;;  %s1683_s18 = smov 0  }
  0x12   :  { %s1685_s19 = smov 0   ;;  %s1687_s20 = smov 0  }
  0x13 LB: > { %1985 = sst [smem:[#allocation22_spill]] %s1579_s13  ;;  %s1717_s24 = sadd.s32 4294967295, %s1607_s20   ;;  %s1607_s20 = sphi %s1687_s20, %s31_s20   ;;  %s1603_s19 = sphi %s1685_s19, %s2021_s19   ;;  %s1599_s18 = sphi %s1683_s18, %s2025_s18   ;;  %s1595_s17 = sphi %s1681_s17, %s2019_s17   ;;  %s1591_s16 = sphi %s1679_s16, %s2024_s16   ;;  %s1587_s15 = sphi %s1677_s15, %s2018_s15   ;;  %s1583_s14 = sphi %s1675_s14, %s2023_s14   ;;  %s1579_s13 = sphi %s1673_s13, %s2022_s13  }
  0x14   : > { %1986 = sst [smem:[#allocation23_spill]] %s1587_s15  ;;  %p1102_p0 = scmp.ge.s32.totalorder %s1607_s20, 1 }
  0x15   : > { %1987 = sst [smem:[#allocation24_spill]] %s1591_s16  ;;  %p87_p1 = scmp.eq.s32.totalorder %s1717_s24, 0 }
  0x16   : > { %1988 = sst [smem:[#allocation25_spill]] %s1595_s17  ;;  %p307_p2 = scmp.lt.s32.totalorder %s1607_s20, 5 }
  0x17   : > { %1989 = sst [smem:[#allocation26_spill]] %s1603_s19  ;;  %s1609_s26 = smov [#allocation11]  }
  0x18   : > { %s1990_s4 = sld [smem:[#allocation33_spill]]  ;;  %p1722_p3 = pnand %p1102_p0, %p307_p2 }
  0x19   : > { %s332_s27 = sshll.u32 %s1609_s26, 4  ;;  %s1992_s5 = sld [smem:[#allocation34_spill]]  ;;  %s333_s27 = int_to_ptr.vmem [resolvable:$true] %s332_s27 }
  0x1a   : > { %p1161_p4 = pneg %p1722_p3  ;;  %s1610_s12 = smov [#allocation12]  }
  0x1b   : > { %s346_s21 = sshll.u32 %s1610_s12, 4  ;;  %s1968_s22 = smov 256   ;;  %s347_s21 = int_to_ptr.vmem [resolvable:$true] %s346_s21 }
  0x1c   : > { %p1733_p5 = pnand %p1161_p4, %p87_p1  ;;  %s1969_s26 = smov 16  }
  0x1d   : > { %s1101_s28 = sadd.s32 4294967294, %s1607_s20   ;;  %s40_s29 = sadd.s32 1, %s1599_s18 }
  0x1e   : > { %s330_s23 = sshll.u32 %s1990_s4, 4  ;;  %p41_p6 = scmp.ge.s32.totalorder %s40_s29, 2  ;;  %s331_s23 = int_to_ptr.hbm [resolvable:$true] %s330_s23 }
  0x1f   : > { %s344_s30 = sshll.u32 %s1992_s5, 4  ;;  %s43_s12 = sadd.s32 1, %s1603_s19  ;;  %s345_s30 = int_to_ptr.hbm [resolvable:$true] %s344_s30 }
  0x20   : > { %1167 = dma.hbm_to_vmem [thread:$0]  (!%p1733_p5), %s331_s23, 8192, %s333_s27, [#allocation10], %s1968_s22, %s1968_s22, %s1969_s26  }
  0x21   : > { %1170 = dma.hbm_to_vmem [thread:$0]  (!%p1733_p5), %s345_s30, 2048, %s347_s21, [#allocation13], %s1968_s22, %s1968_s22, %s1969_s26  }
  0x22   : > { %s73_s4 = sadd.s32 1, %s1587_s15  ;;  %p80_p7 = scmp.ne.s32.totalorder %s1587_s15, %s1583_s14 }
  0x23   : > { %s2027_s29 = smov (%p41_p6, %s40_s29), 0  ;;  %s2029_s12 = smov (!%p41_p6, %s43_s12), %s1603_s19 }
  0x24   : > { %1994 = sst [smem:[#allocation27_spill]] %s2027_s29  ;;  %s69_s23 = ssub.s32 %s1599_s18, %s2027_s29 }
  0x25   : > { %p81_p8 = scmp.eq.s32.totalorder %s1607_s20, 0  ;;  %p45_p9 = scmp.ge.s32.totalorder %s2029_s12, 2 }
  0x26   : > { %p86_p10 = scmp.ne.s32.totalorder %s1583_s14, %s1579_s13  ;;  %p294_p12 = scmp.eq.s32.totalorder %s1717_s24, 3 }
  0x27   : > { %p1761_p11 = por %p81_p8, %p80_p7  ;;  %s2031_s12 = smov (%p45_p9, %s2029_s12), 0 }
  0x28   : > { %1996 = sst [smem:[#allocation28_spill]] %s2031_s12  ;;  %p1770_p13 = por %p87_p1, %p86_p10 }
  0x29   : > { %p1774_p0 = por %p294_p12, %p80_p7  ;;  %s68_s22 = ssub.s32 %s1603_s19, %s2031_s12 }
  0x2a   : > { %p300_p2 = scmp.eq.s32.totalorder %s1101_s28, 3  ;;  %s70_s26 = sor.u32 %s69_s23, %s68_s22 }
  0x2b   : > { %s1998_s21 = scalar_select %p1774_p0, 1, 0 }
  0x2c   : > { %p1192_p4 = scmp.lt.s32.totalorder %s1607_s20, 4  ;;  %p71_p6 = scmp.eq.s32.totalorder %s70_s26, 0 }
  0x2d   : > { %1999 = sst [smem:[#allocation29_spill]] %s1998_s21  ;;  %p1781_p8 = por %p300_p2, %p86_p10 }
  0x2e   : > { %s385_s13 = sand.u32 1, %s1587_s15   ;;  %s1109_s16 = sshll.u32 %s1599_s18, 1 }
  0x2f   : > { %s1788_s10 = scalar_select %p71_p6, %s1587_s15, %s73_s4  }
  0x30   : > { %s1108_s17 = sshll.u32 %s385_s13, 4  ;;  %s1110_s8 = sshll.u32 %s1603_s19, 2 }
  0x31   : > { %2001 = sst [smem:[#allocation30_spill]] %s1788_s10  ;;  %s387_s21 = scalar_lea.vmem [#allocation6], %s1108_s17 }
  0x32   : > { %s398_s12 = sshll.u32 %s387_s21, 4  ;;  %s392_s28 = sadd.s32 %s1110_s8, %s1109_s16  ;;  %s399_s12 = int_to_ptr.vmem [resolvable:$true] %s398_s12 }
  0x33   : > { %s1111_s22 = sshll.u32 %s392_s28, 3  ;;  %p1796_p7 = pnand %p1192_p4, %p1761_p11 }
  0x34   : > { %s2003_s1 = sld [smem:[#allocation32_spill]]  ;;  %s1803_s10 = sshll.u32 %s385_s13, 3 }
  0x35   : > { %s2004_s8 = sand.u32 1, %s1607_s20   ;;  %s2005_s0 = sld [smem:[#allocation31_spill]] }
  0x36   : > { %s384_s16 = scalar_lea.sflag [#allocation7], %s2004_s8  ;;  %s1613_s29 = smov [#allocation3]  }
  0x37   : > { %s321_s23 = sshll.u32 %s1613_s29, 4  ;;  %s2006_s6 = sld [smem:[#allocation35_spill]]  ;;  %s322_s23 = int_to_ptr.vmem [resolvable:$true] %s321_s23 }
  0x38   : > { %s1614_s8 = smov [#allocation14]   ;;  %s2008_s27 = smov 256  }
  0x39   : > { %s409_s29 = scalar_lea.vmem [#allocation8], %s1803_s10 }
  0x3a   : > { %s394_s4 = scalar_lea.hbm %s2003_s1, %s1111_s22  ;;  %s360_s1 = sshll.u32 %s1614_s8, 4  ;;  %s361_s1 = int_to_ptr.vmem [resolvable:$true] %s360_s1 }
  0x3b   : > { %s396_s17 = sshll.u32 %s394_s4, 4  ;;  %s319_s28 = sshll.u32 %s2005_s0, 4  ;;  %s397_s17 = int_to_ptr.hbm [resolvable:$true] %s396_s17  ;;  %s320_s28 = int_to_ptr.hbm [resolvable:$true] %s319_s28 }
  0x3c   : > { %1177 = dma.hbm_to_vmem [thread:$0]  (!%p1796_p7), %s397_s17, 256, %s399_s12, %s384_s16  }
  0x3d   : > { %s358_s4 = sshll.u32 %s2006_s6, 4  ;;  %s1113_s12 = sshll.u32 %s1603_s19, 1  ;;  %s359_s4 = int_to_ptr.hbm [resolvable:$true] %s358_s4 }
  0x3e   : > { %1164 = dma.hbm_to_vmem [thread:$0]  (!%p1733_p5), %s320_s28, 64, %s322_s23, [#allocation4]  }
  0x3f   : > { %s2007_s17 = smov 16   ;;  %s413_s21 = sadd.s32 %s1599_s18, %s1113_s12 }
  0x40   : > { %1173 = dma.hbm_to_vmem [thread:$0]  (!%p1733_p5), %s359_s4, 512, %s361_s1, [#allocation13], %s2008_s27, %s2008_s27, %s2007_s17  }
  0x41   : > { %s419_s13 = sshll.u32 %s409_s29, 4  ;;  %s1114_s22 = sshll.u32 %s413_s21, 3  ;;  %s420_s13 = int_to_ptr.vmem [resolvable:$true] %s419_s13 }
  0x42   : > { %s415_s0 = scalar_lea.hbm %s1959_s2, %s1114_s22  ;;  %s436_s11 = scalar_lea.hbm %s1960_s3, %s1114_s22 }
  0x43   : > { %s417_s8 = sshll.u32 %s415_s0, 4  ;;  %s438_s19 = sshll.u32 %s436_s11, 4  ;;  %s418_s8 = int_to_ptr.hbm [resolvable:$true] %s417_s8  ;;  %s439_s19 = int_to_ptr.hbm [resolvable:$true] %s438_s19 }
  0x44   : > { %1180 = dma.hbm_to_vmem [thread:$0]  (!%p1796_p7), %s418_s8, 128, %s420_s13, %s384_s16  }
  0x45   : > { %s430_s1 = scalar_lea.vmem [#allocation9], %s1803_s10  ;;  %s2009_s12 = sand.u32 1, %s1607_s20  }
  0x46   : > { %s440_s4 = sshll.u32 %s430_s1, 4  ;;  %s427_s17 = scalar_lea.sflag [#allocation10], %s2009_s12  ;;  %s441_s4 = int_to_ptr.vmem [resolvable:$true] %s440_s4 }
  0x47   : > { %1183 = dma.hbm_to_vmem [thread:$0]  (!%p1796_p7), %s439_s19, 128, %s441_s4, %s427_s17  }
  0x48   : > { %449 = sbr.rel (%p1722_p3) target bundleno = 747 (0x2eb), region = 60 }
  0x4d   : > { %1554 = dma.done.wait (%p87_p1), [#allocation4], 64  }
  0x4e   : > { %1556 = vsyncadd (%p87_p1), [#allocation4], 4294967232  ;;  %s456_s0 = sand.u32 1, %s1717_s24   ;;  %s1846_s6 = sand.u32 1, %s1583_s14  }
  0x4f   : > { %s1120_s10 = sshll.u32 %s1846_s6, 4  ;;  %s457_s15 = scalar_lea.sflag [#allocation7], %s456_s0 }
  0x50   : > { %s460_s19 = scalar_lea.vmem [#allocation6], %s1120_s10 }
  0x51   : > { %1558 = dma.done.wait (%p1770_p13), %s457_s15, 384  }
  0x52   : > { %1560 = vsyncadd (%p1770_p13), %s457_s15, 4294966912  ;;  %s1121_s25 = sshll.u32 %s1846_s6, 3  ;;  %s477_s16 = scalar_lea.sflag [#allocation10], %s456_s0 }
  0x53   : > { %s470_s26 = scalar_lea.vmem [#allocation8], %s1121_s25  ;;  %s480_s27 = scalar_lea.vmem [#allocation9], %s1121_s25 }
  0x54   : > { %1562 = dma.done.wait (%p1770_p13), %s477_s16, 128  }
  0x55   : > { %1564 = vsyncadd (%p1770_p13), %s477_s16, 4294967168 }
  0x56   : > { %1566 = dma.done.wait (%p87_p1), [#allocation10], 8192  }
  0x57   : > { %1568 = vsyncadd (%p87_p1), [#allocation10], 4294959104 }
  0x58   : > { %1570 = dma.done.wait (%p87_p1), [#allocation13], 2560  }
  0x59   : > { %1572 = vsyncadd (%p87_p1), [#allocation13], 4294964736  ;;  %v1868_v0 = vld [vmem:[%s460_s19] sm:$0xff]  ;;  %v1870_v1 = vld [vmem:[%s460_s19 + $0x8] sm:$0xff]  ;;  %vm572_vm0 = vcmask 130048   ;;  %s2010_s28 = sld [smem:[#allocation36_spill]] }
  0x5a   : > { %v545_v2 = vld [vmem:[%s1964_s7] sm:$0x3]  ;;  %v1886_v12 = vld [vmem:[%s470_s26] sm:$0xff]  ;;  %vm562_vm1 = vcmask 523264   ;;  %v1278_v19 = vld [vmem:[#allocation3 + $0x2] ss:$0 sm:$0xff] }
  0x5b   : > { %v547_v3 = vperm.slane %v545_v2, 0  ;;  %v548_v4 = vperm.slane %v545_v2, 1  ;;  %v1875_v5 = vld [vmem:[%s480_s27] sm:$0xff]  ;;  %vm587_vm2 = vcmask 23552   ;;  %v1615_v33 = vmov 2   ;;  %v653_v40 = vld [vmem:[#allocation11 + $0xe0] sm:$0xff] }
  0x5c   : > { %v1275_v6 = vld [vmem:[%s1966_s9] ss:$0 sm:$0xff]  ;;  %v1277_v18 = vld [vmem:[#allocation3 + $0x1] ss:$0 sm:$0xff]  ;;  %1272 = vset.pattern.permute.xlu0 %v1615_v33  ;;  %v1616_v34 = vmov 1   ;;  %v1617_v35 = vmov 0  }
  0x5d   : > { %v551_v7 = vmul.f32 %v547_v3, %v1868_v0  ;;  %v552_v8 = vmul.f32 %v548_v4, %v1870_v1  ;;  %v571_v10 = vmul.f32 %v1275_v6, %v1875_v5  ;;  %v1276_v17 = vld [vmem:[#allocation3] ss:$0 sm:$0xff]  ;;  %1273 = vset.pattern.permute.xlu1 %v1616_v34  ;;  %1271 = vset.pattern.permute.xlu2 %v1617_v35  ;;  %v655_v36 = vld [vmem:[#allocation11 + $0xf0] sm:$0xff]  ;;  %v685_v41 = vld [vmem:[#allocation11 + $0x1e0] sm:$0xff]  ;;  %s2011_s23 = sld [smem:[#allocation24_spill]]  ;;  %s542_s26 = scalar_lea.vmem [#allocation15], %s1120_s10 }
  0x5e   : > { %v687_v37 = vld [vmem:[#allocation11 + $0x1f0] sm:$0xff]  ;;  %v656_v38 = vld [vmem:[#allocation11 + $0xf8] sm:$0xff]  ;;  %689 = vmatpush.msra.mxu0 %v655_v36  ;;  %v654_v42 = vld [vmem:[#allocation11 + $0xe8] sm:$0xff]  ;;  %s2012_s8 = sld [smem:[#allocation25_spill]]  ;;  %s923_s27 = sshll.u32 %s542_s26, 4  ;;  %s924_s27 = int_to_ptr.vmem [resolvable:$true] %s923_s27 }
  0x5f   : > { %v1274_v9 = vld [vmem:[%s2010_s28] ss:$0 sm:$0xff]  ;;  %v553_v11 = vadd.f32 %v552_v8, %v551_v7  ;;  %v573_v13 = vsel %vm572_vm0, %v571_v10, 0.0  ;;  %709 = vmatpush.msra.mxu1 %v687_v37  ;;  %729 = vmatpush.msra.mxu2 %v656_v38  ;;  %v686_v43 = vld [vmem:[#allocation11 + $0x1e8] sm:$0xff]  ;;  %v651_v44 = vld [vmem:[#allocation11 + $0xd0] sm:$0xff]  ;;  %s2013_s15 = sld [smem:[#allocation37_spill]] }
  0x60   : > { %574 = vadd.xlane.f32.xlu1 %v573_v13  ;;  %v561_v14 = vmul.f32 %v1274_v9, %v1886_v12  ;;  %v688_v39 = vld [vmem:[#allocation11 + $0x1f8] sm:$0xff]  ;;  %690 = vmatpush.msra.mxu0 %v653_v40  ;;  %v683_v45 = vld [vmem:[#allocation11 + $0x1d0] sm:$0xff]  ;;  %v649_v48 = vld [vmem:[#allocation11 + $0xc0] sm:$0xff]  ;;  %s908_s29 = scalar_lea.sflag [#allocation5], %s1846_s6 }
  0x61   : > { %554 = vadd.xlane.f32.xlu0 %v553_v11  ;;  %749 = vmatpush.msra.mxu3 %v688_v39  ;;  %v652_v46 = vld [vmem:[#allocation11 + $0xd8] sm:$0xff]  ;;  %v681_v49 = vld [vmem:[#allocation11 + $0x1c0] sm:$0xff]  ;;  %v650_v50 = vld [vmem:[#allocation11 + $0xc8] sm:$0xff] }
  0x62   : > { %v563_v15 = vsel %vm562_vm1, %v561_v14, 0.0  ;;  %710 = vmatpush.msra.mxu1 %v685_v41  ;;  %v684_v47 = vld [vmem:[#allocation11 + $0x1d8] sm:$0xff]  ;;  %730 = vmatpush.msra.mxu2 %v654_v42  ;;  %v682_v51 = vld [vmem:[#allocation11 + $0x1c8] sm:$0xff]  ;;  %v647_v52 = vld [vmem:[#allocation11 + $0xb0] sm:$0xff] }
  0x63   : > { %750 = vmatpush.msra.mxu3 %v686_v43  ;;  %691 = vmatpush.msra.mxu0 %v651_v44  ;;  %v679_v53 = vld [vmem:[#allocation11 + $0x1b0] sm:$0xff]  ;;  %v648_v54 = vld [vmem:[#allocation11 + $0xb8] sm:$0xff]  ;;  %v645_v56 = vld [vmem:[#allocation11 + $0xa0] sm:$0xff]  ;;  %s1132_s11 = sshll.u32 %s2011_s23, 1 }
  0x64   : > { %711 = vmatpush.msra.mxu1 %v683_v45  ;;  %731 = vmatpush.msra.mxu2 %v652_v46  ;;  %v680_v55 = vld [vmem:[#allocation11 + $0x1b8] sm:$0xff]  ;;  %v677_v57 = vld [vmem:[#allocation11 + $0x1a0] sm:$0xff]  ;;  %v646_v58 = vld [vmem:[#allocation11 + $0xa8] sm:$0xff]  ;;  %s1133_s1 = sshll.u32 %s2012_s8, 2 }
  0x65   : > { %751 = vmatpush.msra.mxu3 %v684_v47  ;;  %692 = vmatpush.msra.mxu0 %v649_v48  ;;  %v678_v59 = vld [vmem:[#allocation11 + $0x1a8] sm:$0xff]  ;;  %v643_v60 = vld [vmem:[#allocation11 + $0x90] sm:$0xff]  ;;  %v644_v63 = vld [vmem:[#allocation11 + $0x98] sm:$0xff]  ;;  %s919_s4 = sadd.s32 %s1133_s1, %s1132_s11  ;;  %s2014_s25 = smov %s2013_s15 }
  0x66   : > { %712 = vmatpush.msra.mxu1 %v681_v49  ;;  %732 = vmatpush.msra.mxu2 %v650_v50  ;;  %v675_v61 = vld [vmem:[#allocation11 + $0x190] sm:$0xff]  ;;  %v676_v2 = vld [vmem:[#allocation11 + $0x198] sm:$0xff]  ;;  %v641_v3 = vld [vmem:[#allocation11 + $0x80] sm:$0xff]  ;;  %s1134_s12 = sshll.u32 %s919_s4, 3  ;;  %s1513_s22 = scalar_lea.hbm %s2014_s25, 64 }
  0x67   : > { %752 = vmatpush.msra.mxu3 %v682_v51  ;;  %693 = vmatpush.msra.mxu0 %v647_v52  ;;  %v673_v4 = vld [vmem:[#allocation11 + $0x180] sm:$0xff]  ;;  %v642_v6 = vld [vmem:[#allocation11 + $0x88] sm:$0xff]  ;;  %v639_v8 = vld [vmem:[#allocation11 + $0x70] sm:$0xff]  ;;  %s921_s19 = scalar_lea.hbm %s2013_s15, %s1134_s12 }
  0x68   : > { %713 = vmatpush.msra.mxu1 %v679_v53  ;;  %733 = vmatpush.msra.mxu2 %v648_v54  ;;  %v674_v7 = vld [vmem:[#allocation11 + $0x188] sm:$0xff]  ;;  %v671_v9 = vld [vmem:[#allocation11 + $0x170] sm:$0xff]  ;;  %v640_v10 = vld [vmem:[#allocation11 + $0x78] sm:$0xff]  ;;  %s925_s21 = sshll.u32 %s921_s19, 4  ;;  %s926_s21 = int_to_ptr.hbm [resolvable:$true] %s925_s21 }
  0x69   : > { %564 = vadd.xlane.f32.xlu0 %v563_v15  ;;  %753 = vmatpush.msra.mxu3 %v680_v55  ;;  %v672_v11 = vld [vmem:[#allocation11 + $0x178] sm:$0xff]  ;;  %v637_v13 = vld [vmem:[#allocation11 + $0x60] sm:$0xff]  ;;  %v638_v15 = vld [vmem:[#allocation11 + $0x68] sm:$0xff]  ;;  %s1507_s30 = sshra.s32 %s926_s21, 4  ;;  %s1508_s30 = int_to_ptr.hbm [resolvable:$true] %s1507_s30 }
  0x6a   : > { %694 = vmatpush.msra.mxu0 %v645_v56  ;;  %714 = vmatpush.msra.mxu1 %v677_v57  ;;  %v669_v14 = vld [vmem:[#allocation11 + $0x160] sm:$0xff]  ;;  %v632_v34 = vld [vmem:[#allocation11 + $0x38] sm:$0xff]  ;;  %v630_v39 = vld [vmem:[#allocation11 + $0x28] sm:$0xff]  ;;  %s1509_s13 = scalar_lea.hbm %s1508_s30, 16  ;;  %p1514_p9 = scmp.lt.s32.totalorder %s1508_s30, %s2014_s25 }
  0x6b   : > { %734 = vmatpush.msra.mxu2 %v646_v58  ;;  %754 = vmatpush.msra.mxu3 %v678_v59  ;;  %v664_v35 = vld [vmem:[#allocation11 + $0x138] sm:$0xff]  ;;  %v629_v36 = vld [vmem:[#allocation11 + $0x20] sm:$0xff]  ;;  %v662_v40 = vld [vmem:[#allocation11 + $0x128] sm:$0xff]  ;;  %p1510_p1 = scmp.ne.s32.totalorder %s1508_s30, %s1509_s13  ;;  %p1515_p10 = scmp.lt.s32.totalorder %s1513_s22, %s1509_s13 }
  0x6c   : > { %695 = vmatpush.msra.mxu0 %v643_v60  ;;  %715 = vmatpush.msra.mxu1 %v675_v61  ;;  %v661_v37 = vld [vmem:[#allocation11 + $0x120] sm:$0xff]  ;;  %v627_v42 = vld [vmem:[#allocation11 + $0x10] sm:$0xff]  ;;  %v628_v45 = vld [vmem:[#allocation11 + $0x18] sm:$0xff] }
  0x6d   : > { %735 = vmatpush.msra.mxu2 %v644_v63  ;;  %755 = vmatpush.msra.mxu3 %v676_v2  ;;  %v659_v43 = vld [vmem:[#allocation11 + $0x110] sm:$0xff]  ;;  %v660_v46 = vld [vmem:[#allocation11 + $0x118] sm:$0xff]  ;;  %v625_v49 = vld [vmem:[#allocation11] sm:$0xff]  ;;  %p1511_p3 = pnand %p1510_p1, %p1774_p0  ;;  %p1516_p11 = por %p1515_p10, %p1514_p9 }
  0x6e   : > { %696 = vmatpush.msra.mxu0 %v641_v3  ;;  %716 = vmatpush.msra.mxu1 %v673_v4  ;;  %v657_v50 = vld [vmem:[#allocation11 + $0x100] sm:$0xff]  ;;  %v626_v51 = vld [vmem:[#allocation11 + $0x8] sm:$0xff]  ;;  %v795_v53 = vld [vmem:[#allocation12 + $0x70] sm:$0xff] }
  0x6f   : > { %736 = vmatpush.msra.mxu2 %v642_v6  ;;  %756 = vmatpush.msra.mxu3 %v674_v7  ;;  %v658_v52 = vld [vmem:[#allocation11 + $0x108] sm:$0xff]  ;;  %v796_v54 = vld [vmem:[#allocation12 + $0x78] sm:$0xff]  ;;  %v793_v55 = vld [vmem:[#allocation12 + $0x60] sm:$0xff]  ;;  %p1512_p5 = pneg %p1511_p3 }
  0x70   : > { %697 = vmatpush.msra.mxu0 %v639_v8  ;;  %717 = vmatpush.msra.mxu1 %v671_v9  ;;  %v791_v56 = vld [vmem:[#allocation12 + $0x50] sm:$0xff]  ;;  %v792_v57 = vld [vmem:[#allocation12 + $0x58] sm:$0xff]  ;;  %v789_v60 = vld [vmem:[#allocation12 + $0x40] sm:$0xff] }
  0x71   : > { %737 = vmatpush.msra.mxu2 %v640_v10  ;;  %757 = vmatpush.msra.mxu3 %v672_v11  ;;  %v854_v58 = vld [vmem:[#allocation14 + $0x10] sm:$0xff]  ;;  %v855_v59 = vld [vmem:[#allocation14 + $0x18] sm:$0xff]  ;;  %v790_v61 = vld [vmem:[#allocation12 + $0x48] sm:$0xff]  ;;  %p1517_p12 = pnand %p1516_p11, %p1512_p5 }
  0x72   : > { %698 = vmatpush.msra.mxu0 %v637_v13  ;;  %718 = vmatpush.msra.mxu1 %v669_v14  ;;  %v853_v63 = vld [vmem:[#allocation14 + $0x8] sm:$0xff]  ;;  %v787_v2 = vld [vmem:[#allocation12 + $0x30] sm:$0xff]  ;;  %v788_v3 = vld [vmem:[#allocation12 + $0x38] sm:$0xff] }
  0x73   : > { %738 = vmatpush.msra.mxu2 %v638_v15  ;;  %v785_v4 = vld [vmem:[#allocation12 + $0x20] sm:$0xff]  ;;  %v786_v6 = vld [vmem:[#allocation12 + $0x28] sm:$0xff]  ;;  %v783_v7 = vld [vmem:[#allocation12 + $0x10] sm:$0xff] }
  0x74   : > { %v784_v8 = vld [vmem:[#allocation12 + $0x18] sm:$0xff]  ;;  %v781_v9 = vld [vmem:[#allocation12] sm:$0xff]  ;;  %v782_v10 = vld [vmem:[#allocation12 + $0x8] sm:$0xff] }
  0xd3   : > { %v575_v20 = vpop.xlane.xlu1 %574 }
  0xd4   : > { %v555_v16 = vpop.xlane.xlu0 %554  ;;  %v585_v24 = vmul.f32 %v1278_v19, %v575_v20  ;;  %v667_v19 = vld [vmem:[#allocation11 + $0x150] sm:$0xff] }
  0xd5   : > { %v578_v22 = vmul.f32 %v1276_v17, %v555_v16  ;;  %v670_v16 = vld [vmem:[#allocation11 + $0x168] sm:$0xff]  ;;  %719 = vmatpush.msra.mxu1 %v667_v19 }
  0xd6   : > { %758 = vmatpush.msra.mxu3 %v670_v16 }
  0xdc   : > { %v565_v21 = vpop.xlane.xlu0 %564 }
  0xdd   : > { %v581_v23 = vmul.f32 %v1277_v18, %v565_v21  ;;  %v635_v18 = vld [vmem:[#allocation11 + $0x50] sm:$0xff]  ;;  %v636_v21 = vld [vmem:[#allocation11 + $0x58] sm:$0xff] }
  0xde   : > { %699 = vmatpush.msra.mxu0 %v635_v18  ;;  %739 = vmatpush.msra.mxu2 %v636_v21 }
  0xdf   : > { %v582_v25 = vadd.f32 %v581_v23, %v578_v22  ;;  %v668_v22 = vld [vmem:[#allocation11 + $0x158] sm:$0xff]  ;;  %v633_v23 = vld [vmem:[#allocation11 + $0x40] sm:$0xff] }
  0xe0   : > { %759 = vmatpush.msra.mxu3 %v668_v22  ;;  %700 = vmatpush.msra.mxu0 %v633_v23 }
  0xe1   : > { %v586_v26 = vadd.f32 %v585_v24, %v582_v25  ;;  %v665_v24 = vld [vmem:[#allocation11 + $0x140] sm:$0xff] }
  0xe2   : > { %720 = vmatpush.msra.mxu1 %v665_v24 }
  0xe3   : > { %v588_v27 = vsel %vm587_vm2, %v586_v26, -inf }
  0xe4   : > { %589 = vmax.xlane.f32.xlu1 %v588_v27  ;;  %v666_v27 = vld [vmem:[#allocation11 + $0x148] sm:$0xff] }
  0xe5   : > { %760 = vmatpush.msra.mxu3 %v666_v27 }
  0xe7   : > { %761 = vmatpush.msra.mxu3 %v664_v35 }
  0xe9   : > { %762 = vmatpush.msra.mxu3 %v662_v40 }
  0xeb   : > { %763 = vmatpush.msra.mxu3 %v660_v46 }
  0xed   : > { %764 = vmatpush.msra.mxu3 %v658_v52 }
  0xef   : > { %893 = vmatpush.msrb.mxu3 %v855_v59 }
  0xf1   : > { %894 = vmatpush.msrb.mxu3 %v853_v63 }
 0x157   : > { %v590_v28 = vpop.xlane.xlu1 %589 }
 0x158   : > { %v591_v29 = vsub.f32 %v586_v26, %v590_v28  ;;  %v634_v26 = vld [vmem:[#allocation11 + $0x48] sm:$0xff] }
 0x159   : > { %740 = vmatpush.msra.mxu2 %v634_v26 }
 0x15a   : > { %v592_v30 = vmul.f32 1.442695, %v591_v29  ;;  %v631_v29 = vld [vmem:[#allocation11 + $0x30] sm:$0xff] }
 0x15b   : > { %701 = vmatpush.msra.mxu0 %v631_v29  ;;  %741 = vmatpush.msra.mxu2 %v632_v34 }
 0x15c   : > { %1279 = vpow2.f32 %v592_v30  ;;  %v663_v30 = vld [vmem:[#allocation11 + $0x130] sm:$0xff] }
 0x15d   : > { %721 = vmatpush.msra.mxu1 %v663_v30  ;;  %702 = vmatpush.msra.mxu0 %v629_v36 }
 0x15e   : > { %742 = vmatpush.msra.mxu2 %v630_v39 }
 0x15f   : > { %722 = vmatpush.msra.mxu1 %v661_v37  ;;  %703 = vmatpush.msra.mxu0 %v627_v42 }
 0x160   : > { %743 = vmatpush.msra.mxu2 %v628_v45 }
 0x161   : > { %723 = vmatpush.msra.mxu1 %v659_v43  ;;  %704 = vmatpush.msra.mxu0 %v625_v49 }
 0x162   : > { %v1891_v31 = vpop.eup %1279  ;;  %744 = vmatpush.msra.mxu2 %v626_v51 }
 0x163   : > { %v594_v32 = vsel %vm587_vm2, %v1891_v31, 0.0  ;;  %724 = vmatpush.msra.mxu1 %v657_v50  ;;  %808 = vmatpush.msrb.mxu0 %v795_v53 }
 0x164   : > { %595 = vadd.xlane.f32.xlu2 %v594_v32  ;;  %873 = vmatpush.msrb.mxu2 %v854_v58 }
 0x165   : > { %828 = vmatpush.msrb.mxu1 %v796_v54  ;;  %809 = vmatpush.msrb.mxu0 %v793_v55 }
 0x167   : > { %810 = vmatpush.msrb.mxu0 %v791_v56 }
 0x169   : > { %811 = vmatpush.msrb.mxu0 %v789_v60 }
 0x16b   : > { %812 = vmatpush.msrb.mxu0 %v787_v2 }
 0x16d   : > { %813 = vmatpush.msrb.mxu0 %v785_v4 }
 0x16f   : > { %814 = vmatpush.msrb.mxu0 %v783_v7 }
 0x171   : > { %815 = vmatpush.msrb.mxu0 %v781_v9 }
 0x1d7   : > { %v1894_v62 = vpop.xlane.xlu2 %595 }
 0x1d8   : > { %1281 = vrcp.f32 %v1894_v62  ;;  %v608_v28 = vand.u32 2147483648, %v1894_v62  ;;  %v606_v33 = vand.u32 2147483647, %v1894_v62  ;;  %vm602_vm4 = vweird.f32 %v1894_v62 }
 0x1da   : > { %v609_v41 = vor.u32 1.1754944e-38, %v608_v28  ;;  %vm607_vm6 = vcmp.eq.f32.partialorder %v606_v33, 8.507059e+37 }
 0x1de   : > { %v1282_v17 = vpop.eup %1281 }
 0x1df   : > { %v598_v20 = vmul.f32 %v1282_v17, %v1894_v62  ;;  %vm603_vm3 = vweird.f32 %v1282_v17  ;;  %v852_v62 = vld [vmem:[#allocation14] sm:$0xff] }
 0x1e0   : > { %vm604_vm5 = vmor %vm602_vm4, %vm603_vm3  ;;  %874 = vmatpush.msrb.mxu2 %v852_v62 }
 0x1e1   : > { %v599_v25 = vsub.f32 1.0, %v598_v20 }
 0x1e3   : > { %v600_v32 = vmul.f32 %v1282_v17, %v599_v25 }
 0x1e5   : > { %v601_v38 = vadd.f32 %v1282_v17, %v600_v32 }
 0x1e7   : > { %v605_v44 = vsel %vm604_vm5, %v1282_v17, %v601_v38 }
 0x1e8   : > { %v610_v47 = vsel %vm607_vm6, %v609_v41, %v605_v44 }
 0x1e9   : > { %v611_v48 = vmul.f32 %v1891_v31, %v610_v47  ;;  %v794_v31 = vld [vmem:[#allocation12 + $0x68] sm:$0xff] }
 0x1ea   : > { %829 = vmatpush.msrb.mxu1 %v794_v31 }
 0x1eb   : > { %775 = vperm.xlu1 %1273, %v611_v48   ;;  %846 = vperm.xlu0 %1272, %v611_v48  }
 0x1ec   : > { %618 = vperm.xlu2 %1271, %v611_v48   ;;  %830 = vmatpush.msrb.mxu1 %v792_v57 }
 0x1ee   : > { %831 = vmatpush.msrb.mxu1 %v790_v61 }
 0x1f0   : > { %832 = vmatpush.msrb.mxu1 %v788_v3 }
 0x1f2   : > { %833 = vmatpush.msrb.mxu1 %v786_v6 }
 0x1f4   : > { %834 = vmatpush.msrb.mxu1 %v784_v8 }
 0x1f6   : > { %835 = vmatpush.msrb.mxu1 %v782_v10 }
 0x246   : > { %v619_v11 = vpop.permute.xlu2 %618 }
 0x247   : > { %v621_v13 = vmul.f32 %v619_v11, %v1868_v0  ;;  %v622_v14 = vmul.f32 %v619_v11, %v1870_v1 }
 0x249   : > { %705 = vmatmul.f32.vlgmr.msra.gmra.mxu0 %v621_v13  ;;  %725 = vmatmul.f32.vlgmr.msra.gmra.mxu1 %v622_v14 }
 0x24a   : > { %745 = vmatmul.f32.vlgmr.msra.gmra.mxu2 %v621_v13  ;;  %765 = vmatmul.f32.vlgmr.msra.gmra.mxu3 %v622_v14 }
 0x25d   : > { %v776_v15 = vpop.permute.xlu1 %775  ;;  %v847_v16 = vpop.permute.xlu0 %846 }
 0x25e   : > { %v778_v17 = vmul.f32 %v776_v15, %v1886_v12  ;;  %v849_v18 = vmul.f32 %v847_v16, %v1875_v5 }
 0x260   : > { %1127 = vmatmul.msk.f32.vlgmr.msrb.gmra.mxu0 %vm562_vm1, %v778_v17  ;;  %1128 = vmatmul.msk.f32.vlgmr.msrb.gmra.mxu1 %vm562_vm1, %v778_v17 }
 0x261   : > { %1129 = vmatmul.msk.f32.vlgmr.msrb.gmra.mxu2 %vm572_vm0, %v849_v18  ;;  %1130 = vmatmul.msk.f32.vlgmr.msrb.gmra.mxu3 %vm572_vm0, %v849_v18 }
 0x2c6   : > { %v706_v0 = vpop.f32.mrf.mxu0  ;;  %v726_v1 = vpop.f32.mrf.mxu1 }
 0x2c7   : > { %v727_v5 = vadd.f32 %v726_v1, %v706_v0 }
 0x2cd   : > { %v746_v19 = vpop.f32.mrf.mxu2  ;;  %v766_v20 = vpop.f32.mrf.mxu3 }
 0x2ce   : > { %v767_v22 = vadd.f32 %v766_v20, %v746_v19 }
 0x2dd   : > { %v817_v12 = vpop.f32.mrf.mxu0  ;;  %v837_v21 = vpop.f32.mrf.mxu1 }
 0x2de   : > { %v840_v23 = vadd.f32 %v817_v12, %v727_v5  ;;  %v841_v24 = vadd.f32 %v837_v21, %v767_v22 }
 0x2e4   : > { %v876_v25 = vpop.f32.mrf.mxu2  ;;  %v896_v26 = vpop.f32.mrf.mxu3 }
 0x2e5   : > { %v899_v27 = vadd.f32 %v876_v25, %v840_v23  ;;  %v900_v28 = vadd.f32 %v896_v26, %v841_v24 }
 0x2e7   : > { %905 = vst [vmem:[%s542_s26] sm:$0xff] %v899_v27 }
 0x2e8   : > { %906 = vst [vmem:[%s542_s26 + $0x8] sm:$0xff] %v900_v28 }
 0x2e9   : > { %1520 = shalt.err (!%p1517_p12)
}
 0x2ea   : > { %1159 = dma.vmem_to_hbm [thread:$0]  (%p1774_p0), %s924_s27, 256, %s926_s21, %s908_s29  }
 0x2eb PF: > { %s2016_s6 = sld [smem:[#allocation22_spill]]  ;;  %p1197_p13 = scmp.ge.s32.totalorder %s1607_s20, 2 }
 0x2ed   : > { %p1185_p2 = pnand %p1197_p13, %p1781_p8 }
 0x2ef   : > { %p1186_p4 = pneg %p1185_p2 }
 0x2f1   : > { %s937_s8 = sand.u32 1, %s2016_s6  }
 0x2f2   : > { %s938_s11 = scalar_lea.sflag [#allocation5], %s937_s8 }
 0x2f3   : > { %1574 = dma.done.wait (%p1186_p4), %s938_s11, 256  }
 0x2f4   : > { %1576 = vsyncadd (%p1186_p4), %s938_s11, 4294967040  ;;  %s31_s20 = sadd.s32 1, %s1607_s20   ;;  %s2017_s1 = sld [smem:[#allocation23_spill]] }
 0x2f5   : > { %p28_p6 = scmp.ge.s32.totalorder %s31_s20, 6   ;;  %s2018_s15 = sld [smem:[#allocation30_spill]] }
 0x2f6   : > { %s2019_s17 = sld [smem:[#allocation26_spill]]  ;;  %s2022_s13 = smov %s1583_s14 }
 0x2f7   : > { %s2020_s4 = sld [smem:[#allocation27_spill]]  ;;  %s2024_s16 = smov %s1599_s18 }
 0x2f8   : > { %s2021_s19 = sld [smem:[#allocation28_spill]] }
 0x2f9   :  { %30 = sbr.rel (!%p28_p6) target bundleno = 19 (0x13), region = 146 }
 0x2fa   : > { %s2023_s14 = smov %s2017_s1 }
 0x2fd   : > { %s2025_s18 = smov %s2020_s4 }
 0x2fe   :  { %944 = vsyncpa [#allocation4], 1 }
 0x2ff   :  { %946 = vsyncpa [#allocation4 + $0x1], 1 }
 0x300   :  { %947 = vsyncpa [#allocation7], 1 }
 0x301   :  { %949 = vsyncpa [#allocation7 + $0x1], 1 }
 0x302   :  { %950 = vsyncpa [#allocation10], 1 }
 0x303   :  { %952 = vsyncpa [#allocation10 + $0x1], 1 }
 0x304   :  { %953 = vsyncpa [#allocation13], 1 }
 0x305   :  { %954 = vsyncpa [#allocation5], 1 }
 0x306   :  { %956 = vsyncpa [#allocation5 + $0x1], 1 }

</bundles_post_ra>
